<compile_context>
chip_gen: v6e
topology: v6e:2x2x1
jax: 0.10.0
libtpu: 0.0.40
codegen_flags: <defaults>
</compile_context>

<pallas_src>
import functools

import numpy as np
import jax
import jax.numpy as jnp
from jax.experimental import pallas as pl
from jax.experimental.pallas import tpu as pltpu


def _round_up(x, m):
    return ((x + m - 1) // m) * m


# ----------------------------------------------------------------------------
# Parameter construction (same math as the PyTorch create_dft_kernels)
# ----------------------------------------------------------------------------
def create_dft_kernels(n_fft, freq_bins=None, fmin=50, fmax=6000, sr=44100):
    if freq_bins is None:
        freq_bins = (n_fft - 1) // 2 + 1
    s = np.arange(n_fft)
    wsin = np.zeros((freq_bins, n_fft), dtype=np.float64)
    wcos = np.zeros((freq_bins, n_fft), dtype=np.float64)
    start_bin = fmin * n_fft / sr
    scaling_ind = (fmax - fmin) * (n_fft / sr) / freq_bins
    for k in range(freq_bins):
        freq = (k * scaling_ind + start_bin) * sr / n_fft
        wsin[k, :] = np.sin(2 * np.pi * freq * s / sr)
        wcos[k, :] = np.cos(2 * np.pi * freq * s / sr)
    return wsin.astype(np.float32), wcos.astype(np.float32)


# ----------------------------------------------------------------------------
# Pallas kernel (single fused matmul + optional fused epilogue)
# ----------------------------------------------------------------------------
def _make_dft_kernel(Fp, output_format, trainable):
    """Kernel over blocks: x (TM, TK), w (TK, 2*Fp) -> outputs (TM, Fp)."""

    def _accumulate(x_ref, w_ref, acc_ref):
        k = pl.program_id(1)

        @pl.when(k == 0)
        def _():
            acc_ref[...] = jnp.zeros_like(acc_ref)

        acc_ref[...] += jnp.dot(x_ref[...], w_ref[...],
                                preferred_element_type=jnp.float32)

    if output_format == 'Complex':
        def kernel(x_ref, w_ref, real_ref, nimag_ref, acc_ref):
            _accumulate(x_ref, w_ref, acc_ref)

            @pl.when(pl.program_id(1) == pl.num_programs(1) - 1)
            def _():
                acc = acc_ref[...]
                real_ref[...] = acc[:, :Fp]      # x @ cos^T
                nimag_ref[...] = acc[:, Fp:]     # x @ (-sin)^T  == -spec_imag
    else:
        def kernel(x_ref, w_ref, out_ref, acc_ref):
            _accumulate(x_ref, w_ref, acc_ref)

            @pl.when(pl.program_id(1) == pl.num_programs(1) - 1)
            def _():
                acc = acc_ref[...]
                real = acc[:, :Fp]
                nimag = acc[:, Fp:]
                if output_format == 'Magnitude':
                    spec = real * real + nimag * nimag
                    if trainable:
                        out_ref[...] = jnp.sqrt(spec + 1e-8)
                    else:
                        out_ref[...] = jnp.sqrt(spec)
                else:  # 'Phase'
                    out_ref[...] = jnp.arctan2(nimag, real)

    return kernel


@functools.partial(
    jax.jit,
    static_argnames=("Fp", "TM", "TK", "output_format", "trainable"))
def _dft_pallas(x2d, w, *, Fp, TM, TK, output_format, trainable):
    """x2d: (Mp, Kp) padded input; w: (Kp, 2*Fp) fused [cos | -sin] weight."""
    Mp, Kp = x2d.shape
    num_m = Mp // TM
    num_k = Kp // TK
    kernel = _make_dft_kernel(Fp, output_format, trainable)

    if output_format == 'Complex':
        out_shape = (jax.ShapeDtypeStruct((Mp, Fp), jnp.float32),
                     jax.ShapeDtypeStruct((Mp, Fp), jnp.float32))
        out_specs = [pl.BlockSpec((TM, Fp), lambda i, k: (i, 0)),
                     pl.BlockSpec((TM, Fp), lambda i, k: (i, 0))]
        n_out = 2
    else:
        out_shape = jax.ShapeDtypeStruct((Mp, Fp), jnp.float32)
        out_specs = pl.BlockSpec((TM, Fp), lambda i, k: (i, 0))
        n_out = 1

    itemsize = jnp.dtype(x2d.dtype).itemsize
    # double-buffered x + w blocks, f32 accumulator, double-buffered outputs
    vmem_est = (2 * (TM * TK + TK * 2 * Fp) * itemsize
                + TM * 2 * Fp * 4
                + 2 * n_out * TM * Fp * 4)
    vmem_limit = int(min(max(vmem_est * 5 // 4, 32 * 1024 * 1024),
                         64 * 1024 * 1024))

    return pl.pallas_call(
        kernel,
        out_shape=out_shape,
        grid_spec=pltpu.PrefetchScalarGridSpec(
            num_scalar_prefetch=0,
            grid=(num_m, num_k),                      # K (reduction) last
            in_specs=[
                pl.BlockSpec((TM, TK), lambda i, k: (i, k)),
                pl.BlockSpec((TK, 2 * Fp), lambda i, k: (k, 0)),
            ],
            out_specs=out_specs,
            scratch_shapes=[pltpu.VMEM((TM, 2 * Fp), jnp.float32)],
        ),
        compiler_params=pltpu.CompilerParams(
            dimension_semantics=("parallel", "arbitrary"),
            vmem_limit_bytes=vmem_limit),
    )(x2d, w)


# ----------------------------------------------------------------------------
# Module-equivalent wrapper
# ----------------------------------------------------------------------------
class DFTFunc:
    def __init__(self, n_fft=2048, freq_bins=None, fmin=50, fmax=6000,
                 sr=22050, trainable=False, output_format='Complex',
                 compute_dtype=jnp.float32):
        self.output_format = output_format
        self.trainable = trainable
        self.n_fft = n_fft
        self.compute_dtype = compute_dtype

        wsin, wcos = create_dft_kernels(n_fft, freq_bins=freq_bins,
                                        fmin=fmin, fmax=fmax, sr=sr)
        F = wsin.shape[0]
        self.freq_bins = F

        # Pad freq axis to lane width so every output tile is lane-dense.
        Fp = _round_up(F, 128)
        K = n_fft
        itemsize = jnp.dtype(compute_dtype).itemsize
        # Cap TK so the double-buffered (TK, 2*Fp) weight block stays ~<=16 MiB
        # (keeps the pipeline within v7x's 64 MiB VMEM for any n_fft).
        max_tk = max(128, ((8 * 1024 * 1024) // (2 * Fp * itemsize)) // 128 * 128)
        Kp128 = _round_up(K, 128)
        TK = min(Kp128, max_tk, 2048)
        Kp = _round_up(K, TK)

        # Fused, pre-transposed weight: [cos | -sin], zero-padded.
        # Folding the sign into the sine kernel makes all three output
        # formats of the PyTorch module direct functions of (real, nimag).
        w = np.zeros((Kp, 2 * Fp), dtype=np.float32)
        w[:K, :F] = wcos.T
        w[:K, Fp:Fp + F] = -wsin.T
        self.w = jnp.asarray(w, dtype=compute_dtype)
        self.Fp, self.Kp, self.TK = Fp, Kp, TK

    @staticmethod
    def _broadcast_dim(x):
        if x.ndim == 2:
            return x[:, None, :]
        elif x.ndim == 1:
            return x[None, :]
        elif x.ndim == 3:
            return x
        raise ValueError(
            'Only support input with shape = (batch, len) or shape = (len)')

    def __call__(self, x, output_format=None):
        output_format = output_format or self.output_format
        if output_format not in ('Complex', 'Magnitude', 'Phase'):
            raise ValueError(output_format)

        xb = self._broadcast_dim(jnp.asarray(x))
        lead = xb.shape[:-1]
        L = xb.shape[-1]
        assert L == self.n_fft, f"expected last dim {self.n_fft}, got {L}"
        M = int(np.prod(lead))
        x2d = xb.reshape(M, L).astype(self.compute_dtype)

        # M tile: 256 rows (MXU-height on v6e/v7x) when there is enough work,
        # otherwise the smallest sublane-aligned tile that covers M.
        TM = min(256, _round_up(M, 8))
        Mp = _round_up(M, TM)
        if Mp != M or self.Kp != L:
            x2d = jnp.pad(x2d, ((0, Mp - M), (0, self.Kp - L)))

        out = _dft_pallas(x2d, self.w, Fp=self.Fp, TM=TM, TK=self.TK,
                          output_format=output_format,
                          trainable=self.trainable)

        F = self.freq_bins
        if output_format == 'Complex':
            real, nimag = out
            real = real[:M, :F].reshape(lead + (F,))
            nimag = nimag[:M, :F].reshape(lead + (F,))
            return jnp.squeeze(jax.lax.complex(real, nimag))
        else:
            return out[:M, :F].reshape(lead + (F,))


# ----------------------------------------------------------------------------
# Test
# ----------------------------------------------------------------------------
if __name__ == "__main__":
    n_fft = 256          # freq_bins defaults to (256-1)//2 + 1 = 128
    batch = 2
    sr = 22050

    key = jax.random.PRNGKey(0)
    x = jax.random.normal(key, (batch, n_fft), dtype=jnp.float32)

    module = DFTFunc(n_fft=n_fft, sr=sr, output_format='Complex')

    # Complex path
    out = jax.block_until_ready(module(x))
    wsin, wcos = create_dft_kernels(n_fft, sr=sr)
    ref_real = x @ jnp.asarray(wcos).T
    ref_imag = x @ jnp.asarray(wsin).T
    ref_c = jax.lax.complex(ref_real, -ref_imag)
    assert out.shape == (batch, (n_fft - 1) // 2 + 1), out.shape
    np.testing.assert_allclose(np.asarray(out), np.asarray(ref_c),
                               rtol=1e-4, atol=1e-3)

    # Fused Magnitude epilogue
    mag = jax.block_until_ready(module(x, output_format='Magnitude'))
    ref_mag = jnp.sqrt(ref_real ** 2 + ref_imag ** 2)
    assert mag.shape == (batch, 1, (n_fft - 1) // 2 + 1), mag.shape
    np.testing.assert_allclose(np.asarray(mag).reshape(batch, -1),
                               np.asarray(ref_mag), rtol=1e-3, atol=2e-3)

    # Fused Phase epilogue (shape check only; atan2 branch cut makes
    # elementwise comparison near +/-pi ill-conditioned)
    ph = jax.block_until_ready(module(x, output_format='Phase'))
    assert ph.shape == (batch, 1, (n_fft - 1) // 2 + 1), ph.shape

    print("KERNEL_OK")
</pallas_src>

<mosaic_0001>
module attributes {stable_mosaic.version = 11 : i64} {
  func.func @kernel(%arg0: i32, %arg1: i32, %arg2: memref<8x256xf32, #tpu.memory_space<vmem>>, %arg3: memref<256x256xf32, #tpu.memory_space<vmem>>, %arg4: memref<8x128xf32, #tpu.memory_space<vmem>>, %arg5: memref<8x128xf32, #tpu.memory_space<vmem>>, %arg6: memref<8x256xf32, #tpu.memory_space<vmem>>) attributes {dimension_semantics = [#tpu.dimension_semantics<parallel>, #tpu.dimension_semantics<arbitrary>], iteration_bounds = array<i64: 1, 1>, scalar_prefetch = 0 : i64, scratch_operands = 1 : i64, tpu.core_type = #tpu.core_type<tc>, window_params = [{transform_indices = @transform_0, window_bounds = array<i64: 8, 256>}, {transform_indices = @transform_1, window_bounds = array<i64: 256, 256>}, {transform_indices = @transform_2, window_bounds = array<i64: 8, 128>}, {transform_indices = @transform_3, window_bounds = array<i64: 8, 128>}]} {
    %c0_i32 = arith.constant 0 : i32
    %0 = arith.cmpi eq, %arg1, %c0_i32 : i32
    %1 = arith.extui %0 : i1 to i32
    %c0_i32_0 = arith.constant 0 : i32
    %2 = arith.cmpi ne, %1, %c0_i32_0 : i32
    scf.if %2 {
      %cst_10 = arith.constant 0.000000e+00 : f32
      %12 = vector.broadcast %cst_10 : f32 to vector<8x256xf32>
      %c0_11 = arith.constant 0 : index
      %c0_12 = arith.constant 0 : index
      %13 = vector.load %arg6[%c0_11, %c0_12] : memref<8x256xf32, #tpu.memory_space<vmem>>, vector<8x256xf32>
      tpu.vector_store %arg6[%c0_11, %c0_12], %12 {strides = array<i32>} : memref<8x256xf32, #tpu.memory_space<vmem>>, vector<8x256xf32>,
    } else {
    }
    %c0 = arith.constant 0 : index
    %c0_1 = arith.constant 0 : index
    %3 = vector.load %arg6[%c0, %c0_1] : memref<8x256xf32, #tpu.memory_space<vmem>>, vector<8x256xf32>
    %c0_2 = arith.constant 0 : index
    %c0_3 = arith.constant 0 : index
    %4 = vector.load %arg2[%c0_2, %c0_3] : memref<8x256xf32, #tpu.memory_space<vmem>>, vector<8x256xf32>
    %c0_4 = arith.constant 0 : index
    %c0_5 = arith.constant 0 : index
    %5 = vector.load %arg3[%c0_4, %c0_5] : memref<256x256xf32, #tpu.memory_space<vmem>>, vector<256x256xf32>
    %cst = arith.constant dense<0.000000e+00> : vector<8x256xf32>
    %6 = tpu.matmul %4, %5, %cst {dimension_numbers = #tpu.dot_dimension_numbers<[1], [0], [0], [1], [0, 0, 1, 1], [], []>} : vector<8x256xf32>, vector<256x256xf32>, vector<8x256xf32> -> vector<8x256xf32>
    %7 = arith.addf %3, %6 : vector<8x256xf32>
    %c0_6 = arith.constant 0 : index
    %c0_7 = arith.constant 0 : index
    %8 = vector.load %arg6[%c0_6, %c0_7] : memref<8x256xf32, #tpu.memory_space<vmem>>, vector<8x256xf32>
    tpu.vector_store %arg6[%c0_6, %c0_7], %7 {strides = array<i32>} : memref<8x256xf32, #tpu.memory_space<vmem>>, vector<8x256xf32>,
    %c0_i32_8 = arith.constant 0 : i32
    %9 = arith.cmpi eq, %arg1, %c0_i32_8 : i32
    %10 = arith.extui %9 : i1 to i32
    %c0_i32_9 = arith.constant 0 : i32
    %11 = arith.cmpi ne, %10, %c0_i32_9 : i32
    scf.if %11 {
      %c0_10 = arith.constant 0 : index
      %c0_11 = arith.constant 0 : index
      %12 = vector.load %arg6[%c0_10, %c0_11] : memref<8x256xf32, #tpu.memory_space<vmem>>, vector<8x256xf32>
      %13 = vector.extract_strided_slice %12 {offsets = [0, 0], sizes = [8, 128], strides = [1, 1]} : vector<8x256xf32> to vector<8x128xf32>
      %c0_12 = arith.constant 0 : index
      %c0_13 = arith.constant 0 : index
      %14 = vector.load %arg4[%c0_12, %c0_13] : memref<8x128xf32, #tpu.memory_space<vmem>>, vector<8x128xf32>
      tpu.vector_store %arg4[%c0_12, %c0_13], %13 {strides = array<i32>} : memref<8x128xf32, #tpu.memory_space<vmem>>, vector<8x128xf32>,
      %15 = vector.extract_strided_slice %12 {offsets = [0, 128], sizes = [8, 128], strides = [1, 1]} : vector<8x256xf32> to vector<8x128xf32>
      %c0_14 = arith.constant 0 : index
      %c0_15 = arith.constant 0 : index
      %16 = vector.load %arg5[%c0_14, %c0_15] : memref<8x128xf32, #tpu.memory_space<vmem>>, vector<8x128xf32>
      tpu.vector_store %arg5[%c0_14, %c0_15], %15 {strides = array<i32>} : memref<8x128xf32, #tpu.memory_space<vmem>>, vector<8x128xf32>,
    } else {
    }
    return
  }
  func.func @transform_0(%arg0: i32, %arg1: i32) -> (i32, i32) {
    %c0_i32 = arith.constant 0 : i32
    return %arg0, %arg1 : i32, i32
  }
  func.func @transform_1(%arg0: i32, %arg1: i32) -> (i32, i32) {
    %c0_i32 = arith.constant 0 : i32
    %c0_i32_0 = arith.constant 0 : i32
    return %arg1, %c0_i32 : i32, i32
  }
  func.func @transform_2(%arg0: i32, %arg1: i32) -> (i32, i32) {
    %c0_i32 = arith.constant 0 : i32
    %c0_i32_0 = arith.constant 0 : i32
    return %arg0, %c0_i32 : i32, i32
  }
  func.func @transform_3(%arg0: i32, %arg1: i32) -> (i32, i32) {
    %c0_i32 = arith.constant 0 : i32
    %c0_i32_0 = arith.constant 0 : i32
    return %arg0, %c0_i32 : i32, i32
  }
}

</mosaic_0001>

<bundles_post_ra>
// kernel: _dft_pallas.1
= control target key start
LH: loop header
LB: loop body
LE: loop exit
PB: predicated region body
PF: predicated region fallthrough
CT: control target
= control target key end

     0   :  { %9 = vsyncpa [#allocation4], 0  ;;  %s359_s0 = inlined_call_operand.hbm [shape: f32[8,256], index: 0, kind: input, shape index: {}]   ;;  %s360_s1 = inlined_call_operand.hbm [shape: f32[256,256], index: 1, kind: input, shape index: {}]   ;;  %s361_s2 = inlined_call_operand.hbm [shape: f32[8,128], index: 2, kind: output, shape index: {0}]   ;;  %s362_s3 = inlined_call_operand.hbm [shape: f32[8,128], index: 3, kind: output, shape index: {1}]  }
   0x1   :  { %10 = vsyncpa [#allocation7], 0 }
   0x2   :  { %11 = vsyncpa [#allocation5], 0 }
   0x3   :  { %12 = vsyncpa [#allocation10], 0  ;;  %s321_s12 = smov [#allocation3]   ;;  %s322_s14 = smov [#allocation6]  }
   0x4   :  { %s19_s13 = sshll.u32 %s321_s12, 4  ;;  %s28_s15 = sshll.u32 %s322_s14, 4  ;;  %s20_s13 = int_to_ptr.vmem [resolvable:$true] %s19_s13  ;;  %s29_s15 = int_to_ptr.vmem [resolvable:$true] %s28_s15 }
   0x5   :  { %s241_s16 = scalar_lea.vmem %s20_s13, 256  ;;  %p246_p1 = scmp.lt.s32.totalorder %s20_s13, %s20_s13 }
   0x6   :  { %p242_p0 = scmp.ne.s32.totalorder %s20_s13, %s241_s16  ;;  %p247_p2 = scmp.lt.s32.totalorder %s241_s16, %s241_s16 }
   0x8   :  { %p248_p3 = por %p247_p2, %p246_p1 }
   0xa   :  { %p249_p4 = pnand %p248_p3, %p242_p0 }
   0xc   :  { %252 = shalt.err (!%p249_p4)
}
   0xd   :  { %22 = dma.hbm_to_vmem [thread:$0]  %s359_s0, 256, %s20_s13, [#allocation4]  }
   0xe   :  { %s261_s19 = scalar_lea.vmem %s29_s15, 8192  ;;  %p266_p6 = scmp.lt.s32.totalorder %s29_s15, %s29_s15 }
   0xf   :  { %p262_p5 = scmp.ne.s32.totalorder %s29_s15, %s261_s19  ;;  %p267_p7 = scmp.lt.s32.totalorder %s261_s19, %s261_s19 }
  0x11   :  { %p268_p8 = por %p267_p7, %p266_p6 }
  0x13   :  { %p269_p9 = pnand %p268_p8, %p262_p5 }
  0x15   :  { %272 = shalt.err (!%p269_p9)
}
  0x16   :  { %s323_s20 = smov 256   ;;  %s324_s21 = smov 16  }
  0x17   :  { %34 = dma.hbm_to_vmem [thread:$0]  %s360_s1, 8192, %s29_s15, [#allocation7], %s323_s20, %s323_s20, %s324_s21  }
  0x18   :  { %313 = dma.done.wait [#allocation4], 256  }
  0x19   :  { %314 = vsyncadd [#allocation4], 4294967040 }
  0x1a   :  { %315 = dma.done.wait [#allocation7], 8192  }
  0x1b   :  { %316 = vsyncadd [#allocation7], 4294959104  ;;  %v82_v0 = vld [vmem:[#allocation6 + $0xf8] sm:$0xff]  ;;  %v81_v1 = vld [vmem:[#allocation6 + $0xf0] sm:$0xff]  ;;  %s325_s0 = smov [#allocation8]   ;;  %s326_s24 = smov [#allocation9]  }
  0x1c   :  { %v80_v2 = vld [vmem:[#allocation6 + $0xe8] sm:$0xff]  ;;  %115 = vmatprep.subr.mxu0 %v82_v0  ;;  %v79_v3 = vld [vmem:[#allocation6 + $0xe0] sm:$0xff]  ;;  %v78_v4 = vld [vmem:[#allocation6 + $0xd8] sm:$0xff]  ;;  %s203_s1 = sshll.u32 %s325_s0, 4  ;;  %s213_s25 = sshll.u32 %s326_s24, 4  ;;  %s204_s1 = int_to_ptr.vmem [resolvable:$true] %s203_s1  ;;  %s214_s25 = int_to_ptr.vmem [resolvable:$true] %s213_s25 }
  0x1d   :  { %116 = vmatpush1.msra.mxu0 %v81_v1  ;;  %v77_v5 = vld [vmem:[#allocation6 + $0xd0] sm:$0xff]  ;;  %v76_v6 = vld [vmem:[#allocation6 + $0xc8] sm:$0xff]  ;;  %v75_v7 = vld [vmem:[#allocation6 + $0xc0] sm:$0xff]  ;;  %s273_s26 = scalar_lea.vmem %s204_s1, 128  ;;  %p278_p11 = scmp.lt.s32.totalorder %s204_s1, %s204_s1 }
  0x1e   :  { %117 = vmatprep.subr.mxu0 %v80_v2  ;;  %v74_v8 = vld [vmem:[#allocation6 + $0xb8] sm:$0xff]  ;;  %v73_v9 = vld [vmem:[#allocation6 + $0xb0] sm:$0xff]  ;;  %v72_v10 = vld [vmem:[#allocation6 + $0xa8] sm:$0xff]  ;;  %p274_p10 = scmp.ne.s32.totalorder %s204_s1, %s273_s26  ;;  %p279_p12 = scmp.lt.s32.totalorder %s273_s26, %s273_s26 }
  0x1f   :  { %118 = vmatpush1.msra.mxu0 %v79_v3  ;;  %v71_v11 = vld [vmem:[#allocation6 + $0xa0] sm:$0xff]  ;;  %v70_v12 = vld [vmem:[#allocation6 + $0x98] sm:$0xff]  ;;  %v69_v13 = vld [vmem:[#allocation6 + $0x90] sm:$0xff] }
  0x20   :  { %119 = vmatprep.subr.mxu0 %v78_v4  ;;  %v68_v14 = vld [vmem:[#allocation6 + $0x88] sm:$0xff]  ;;  %v67_v15 = vld [vmem:[#allocation6 + $0x80] sm:$0xff]  ;;  %v66_v16 = vld [vmem:[#allocation6 + $0x78] sm:$0xff]  ;;  %p280_p13 = por %p279_p12, %p278_p11 }
  0x21   :  { %120 = vmatpush1.msra.mxu0 %v77_v5  ;;  %v65_v17 = vld [vmem:[#allocation6 + $0x70] sm:$0xff]  ;;  %v64_v18 = vld [vmem:[#allocation6 + $0x68] sm:$0xff]  ;;  %v63_v19 = vld [vmem:[#allocation6 + $0x60] sm:$0xff] }
  0x22   :  { %121 = vmatprep.subr.mxu0 %v76_v6  ;;  %v62_v20 = vld [vmem:[#allocation6 + $0x58] sm:$0xff]  ;;  %v61_v21 = vld [vmem:[#allocation6 + $0x50] sm:$0xff]  ;;  %v60_v22 = vld [vmem:[#allocation6 + $0x48] sm:$0xff]  ;;  %p281_p0 = pnand %p280_p13, %p274_p10 }
  0x23   :  { %122 = vmatpush1.msra.mxu0 %v75_v7  ;;  %v59_v23 = vld [vmem:[#allocation6 + $0x40] sm:$0xff]  ;;  %v50_v24 = vld [vmem:[#allocation3 + $0x8] sm:$0xff]  ;;  %v57_v26 = vld [vmem:[#allocation6 + $0x30] sm:$0xff] }
  0x24   :  { %123 = vmatprep.subr.mxu0 %v74_v8  ;;  %v58_v25 = vld [vmem:[#allocation6 + $0x38] sm:$0xff]  ;;  %179 = vmatprep.mubr.f32.mxu0 %v50_v24  ;;  %v56_v27 = vld [vmem:[#allocation6 + $0x28] sm:$0xff]  ;;  %v55_v28 = vld [vmem:[#allocation6 + $0x20] sm:$0xff] }
  0x25   :  { %124 = vmatpush1.msra.mxu0 %v73_v9  ;;  %v54_v29 = vld [vmem:[#allocation6 + $0x18] sm:$0xff]  ;;  %v53_v30 = vld [vmem:[#allocation6 + $0x10] sm:$0xff]  ;;  %v52_v31 = vld [vmem:[#allocation6 + $0x8] sm:$0xff] }
  0x26   :  { %125 = vmatprep.subr.mxu0 %v72_v10  ;;  %v51_v32 = vld [vmem:[#allocation6] sm:$0xff]  ;;  %v114_v33 = vld [vmem:[#allocation6 + $0x1f8] sm:$0xff]  ;;  %v113_v34 = vld [vmem:[#allocation6 + $0x1f0] sm:$0xff] }
  0x27   :  { %126 = vmatpush1.msra.mxu0 %v71_v11  ;;  %v112_v35 = vld [vmem:[#allocation6 + $0x1e8] sm:$0xff]  ;;  %v111_v36 = vld [vmem:[#allocation6 + $0x1e0] sm:$0xff]  ;;  %v110_v37 = vld [vmem:[#allocation6 + $0x1d8] sm:$0xff] }
  0x28   :  { %127 = vmatprep.subr.mxu0 %v70_v12  ;;  %v109_v38 = vld [vmem:[#allocation6 + $0x1d0] sm:$0xff]  ;;  %v108_v39 = vld [vmem:[#allocation6 + $0x1c8] sm:$0xff]  ;;  %v107_v40 = vld [vmem:[#allocation6 + $0x1c0] sm:$0xff] }
  0x29   :  { %128 = vmatpush1.msra.mxu0 %v69_v13  ;;  %v106_v41 = vld [vmem:[#allocation6 + $0x1b8] sm:$0xff]  ;;  %v105_v42 = vld [vmem:[#allocation6 + $0x1b0] sm:$0xff]  ;;  %v104_v43 = vld [vmem:[#allocation6 + $0x1a8] sm:$0xff] }
  0x2a   :  { %129 = vmatprep.subr.mxu0 %v68_v14  ;;  %v103_v44 = vld [vmem:[#allocation6 + $0x1a0] sm:$0xff]  ;;  %v102_v45 = vld [vmem:[#allocation6 + $0x198] sm:$0xff]  ;;  %v101_v46 = vld [vmem:[#allocation6 + $0x190] sm:$0xff] }
  0x2b   :  { %130 = vmatpush1.msra.mxu0 %v67_v15  ;;  %v100_v47 = vld [vmem:[#allocation6 + $0x188] sm:$0xff]  ;;  %v99_v48 = vld [vmem:[#allocation6 + $0x180] sm:$0xff]  ;;  %v98_v49 = vld [vmem:[#allocation6 + $0x178] sm:$0xff] }
  0x2c   :  { %131 = vmatprep.subr.mxu0 %v66_v16  ;;  %v97_v50 = vld [vmem:[#allocation6 + $0x170] sm:$0xff]  ;;  %v96_v51 = vld [vmem:[#allocation6 + $0x168] sm:$0xff]  ;;  %v95_v52 = vld [vmem:[#allocation6 + $0x160] sm:$0xff] }
  0x2d   :  { %132 = vmatpush1.msra.mxu0 %v65_v17  ;;  %v94_v53 = vld [vmem:[#allocation6 + $0x158] sm:$0xff]  ;;  %v93_v54 = vld [vmem:[#allocation6 + $0x150] sm:$0xff]  ;;  %v92_v55 = vld [vmem:[#allocation6 + $0x148] sm:$0xff] }
  0x2e   :  { %133 = vmatprep.subr.mxu0 %v64_v18  ;;  %v91_v56 = vld [vmem:[#allocation6 + $0x140] sm:$0xff]  ;;  %v90_v57 = vld [vmem:[#allocation6 + $0x138] sm:$0xff]  ;;  %v89_v58 = vld [vmem:[#allocation6 + $0x130] sm:$0xff] }
  0x2f   :  { %134 = vmatpush1.msra.mxu0 %v63_v19  ;;  %v88_v59 = vld [vmem:[#allocation6 + $0x128] sm:$0xff]  ;;  %v87_v60 = vld [vmem:[#allocation6 + $0x120] sm:$0xff]  ;;  %v86_v61 = vld [vmem:[#allocation6 + $0x118] sm:$0xff] }
  0x30   :  { %135 = vmatprep.subr.mxu0 %v62_v20  ;;  %v85_v62 = vld [vmem:[#allocation6 + $0x110] sm:$0xff]  ;;  %v84_v63 = vld [vmem:[#allocation6 + $0x108] sm:$0xff]  ;;  %v83_v0 = vld [vmem:[#allocation6 + $0x100] sm:$0xff] }
  0x31   :  { %136 = vmatpush1.msra.mxu0 %v61_v21  ;;  %v49_v1 = vld [vmem:[#allocation3] sm:$0xff] }
  0x32   :  { %137 = vmatprep.subr.mxu0 %v60_v22 }
  0x33   :  { %138 = vmatpush1.msra.mxu0 %v59_v23 }
  0x34   :  { %139 = vmatprep.subr.mxu0 %v58_v25 }
  0x35   :  { %140 = vmatpush1.msra.mxu0 %v57_v26 }
  0x36   :  { %141 = vmatprep.subr.mxu0 %v56_v27 }
  0x37   :  { %142 = vmatpush1.msra.mxu0 %v55_v28 }
  0x38   :  { %143 = vmatprep.subr.mxu0 %v54_v29 }
  0x39   :  { %144 = vmatpush1.msra.mxu0 %v53_v30 }
  0x3a   :  { %145 = vmatprep.subr.mxu0 %v52_v31 }
  0x3b   :  { %146 = vmatpush1.msra.mxu0 %v51_v32 }
  0x3c   :  { %147 = vmatprep.subr.mxu0 %v114_v33 }
  0x3d   :  { %148 = vmatpush2.msra.mxu0 %v113_v34 }
  0x3e   :  { %149 = vmatprep.subr.mxu0 %v112_v35 }
  0x3f   :  { %150 = vmatpush2.msra.mxu0 %v111_v36 }
  0x40   :  { %151 = vmatprep.subr.mxu0 %v110_v37 }
  0x41   :  { %152 = vmatpush2.msra.mxu0 %v109_v38 }
  0x42   :  { %153 = vmatprep.subr.mxu0 %v108_v39 }
  0x43   :  { %154 = vmatpush2.msra.mxu0 %v107_v40 }
  0x44   :  { %155 = vmatprep.subr.mxu0 %v106_v41 }
  0x45   :  { %156 = vmatpush2.msra.mxu0 %v105_v42 }
  0x46   :  { %157 = vmatprep.subr.mxu0 %v104_v43 }
  0x47   :  { %158 = vmatpush2.msra.mxu0 %v103_v44 }
  0x48   :  { %159 = vmatprep.subr.mxu0 %v102_v45 }
  0x49   :  { %160 = vmatpush2.msra.mxu0 %v101_v46 }
  0x4a   :  { %161 = vmatprep.subr.mxu0 %v100_v47 }
  0x4b   :  { %162 = vmatpush2.msra.mxu0 %v99_v48 }
  0x4c   :  { %163 = vmatprep.subr.mxu0 %v98_v49 }
  0x4d   :  { %164 = vmatpush2.msra.mxu0 %v97_v50 }
  0x4e   :  { %165 = vmatprep.subr.mxu0 %v96_v51 }
  0x4f   :  { %166 = vmatpush2.msra.mxu0 %v95_v52 }
  0x50   :  { %167 = vmatprep.subr.mxu0 %v94_v53 }
  0x51   :  { %168 = vmatpush2.msra.mxu0 %v93_v54 }
  0x52   :  { %169 = vmatprep.subr.mxu0 %v92_v55 }
  0x53   :  { %170 = vmatpush2.msra.mxu0 %v91_v56 }
  0x54   :  { %171 = vmatprep.subr.mxu0 %v90_v57 }
  0x55   :  { %172 = vmatpush2.msra.mxu0 %v89_v58 }
  0x56   :  { %173 = vmatprep.subr.mxu0 %v88_v59 }
  0x57   :  { %174 = vmatpush2.msra.mxu0 %v87_v60 }
  0x58   :  { %175 = vmatprep.subr.mxu0 %v86_v61 }
  0x59   :  { %176 = vmatpush2.msra.mxu0 %v85_v62 }
  0x5a   :  { %177 = vmatprep.subr.mxu0 %v84_v63 }
  0x5b   :  { %178 = vmatpush2.msra.mxu0 %v83_v0 }
  0x5c   :  { %180 = vmatmul.mubr.f32.vlgmr.msra.gmra.mxu0 %v49_v1 }
 0x11c   :  { %v181_v2 = vpop.f32.mrf.mxu0 }
 0x11d   :  { %195 = vst [vmem:[#allocation8] sm:$0xff] %v181_v2 }
 0x11e   :  { %v183_v3 = vpop.f32.mrf.mxu0 }
 0x11f   :  { %284 = shalt.err (!%p281_p0)
}
 0x120   :  { %206 = dma.vmem_to_hbm [thread:$0]  %s204_s1, 128, %s361_s2, [#allocation5]   ;;  %196 = vst [vmem:[#allocation9] sm:$0xff] %v183_v3 }
 0x121   :  { %s293_s29 = scalar_lea.vmem %s214_s25, 128  ;;  %p298_p2 = scmp.lt.s32.totalorder %s214_s25, %s214_s25 }
 0x122   :  { %p294_p1 = scmp.ne.s32.totalorder %s214_s25, %s293_s29  ;;  %p299_p3 = scmp.lt.s32.totalorder %s293_s29, %s293_s29 }
 0x124   :  { %p300_p4 = por %p299_p3, %p298_p2 }
 0x126   :  { %p301_p5 = pnand %p300_p4, %p294_p1 }
 0x128   :  { %304 = shalt.err (!%p301_p5)
}
 0x129   :  { %216 = dma.vmem_to_hbm [thread:$0]  %s214_s25, 128, %s362_s3, [#allocation10]  }
 0x12a   :  { %317 = dma.done.wait [#allocation5], 128  }
 0x12b   :  { %318 = vsyncadd [#allocation5], 4294967168 }
 0x12c   :  { %319 = dma.done.wait [#allocation10], 128  }
 0x12d   :  { %320 = vsyncadd [#allocation10], 4294967168 }
 0x12e   :  { %223 = vsyncpa [#allocation4], 1 }
 0x12f   :  { %224 = vsyncpa [#allocation7], 1 }
 0x130   :  { %225 = vsyncpa [#allocation5], 1 }
 0x131   :  { %226 = vsyncpa [#allocation10], 1 }

</bundles_post_ra>
